<compile_context>
chip_gen: v5e
topology: v5e:2x2
jax: 0.10.0
libtpu: 0.0.40
codegen_flags: <defaults>
</compile_context>

<pallas_src>
import jax
import jax.numpy as jnp
from jax.experimental import pallas as pl
from jax.experimental.pallas import tpu as pltpu

# Matmul operand dtype.  f32 at the toy dims below (tight numeric check vs the
# pure-JAX reference); at production 128/256-aligned dims use jnp.bfloat16
# (accumulation stays f32 via preferred_element_type).
_MM_DTYPE = jnp.float32

_TOKEN_TILE = 256                    # production tile; shrunk to divide S below
_VMEM_LIMIT = 48 * 1024 * 1024       # <= ~48 MiB: safe on v5e/v6e (128) and v7x (64)


# ----------------------------- Pallas kernels ------------------------------ #

def _sumsq_inv_kernel(x_ref, inv_ref):
    # Tiled global sum-of-squares -> 1 / (sqrt(ss) + 1e-6) (matches the module's
    # whole-tensor RMSNorm denominator).  Output block is resident (accumulator).
    @pl.when(pl.program_id(0) == 0)
    def _():
        inv_ref[...] = jnp.zeros_like(inv_ref)

    x = x_ref[...]
    inv_ref[...] += jnp.sum(x * x, keepdims=True)

    @pl.when(pl.program_id(0) == pl.num_programs(0) - 1)
    def _():
        inv_ref[...] = 1.0 / (jnp.sqrt(inv_ref[...]) + 1e-6)


def _qkv_rope_kernel(x_ref, nw_ref, inv_ref, w_ref, b_ref, cos_ref, sin_ref,
                     q_ref, k_ref, v_ref):
    # Fused: RMSNorm scale + single QKV matmul + per-head RoPE on the q/k parts.
    xs = x_ref[...] * (nw_ref[...] * inv_ref[0, 0])
    qkv = (jnp.dot(xs.astype(_MM_DTYPE), w_ref[...].astype(_MM_DTYPE),
                   preferred_element_type=jnp.float32) + b_ref[...])

    cos = cos_ref[...]
    sin = sin_ref[...]
    half = cos.shape[-1]
    hd = 2 * half
    dq = q_ref.shape[-1]
    dk = k_ref.shape[-1]

    def rope(sec):
        # q/k columns were permuted at init so each head is [even-half|odd-half].
        outs = []
        for h in range(sec.shape[-1] // hd):
            xe = sec[:, h * hd: h * hd + half]
            xo = sec[:, h * hd + half: (h + 1) * hd]
            outs.append(xe * cos - xo * sin)
            outs.append(xe * sin + xo * cos)
        return jnp.concatenate(outs, axis=-1)

    q_ref[...] = rope(qkv[:, :dq])
    k_ref[...] = rope(qkv[:, dq:dq + dk])
    v_ref[...] = qkv[:, dq + dk:]


def _attn_kernel(q_ref, k_ref, v_ref, o_ref):
    # One (batch, kv_head, group-member) program: causal softmax + PV (RoPE
    # already applied at projection time).
    # TODO(synk): flash-tile the KV axis (online softmax) for production S.
    q = q_ref[...]
    k = k_ref[...]
    S, hd = q.shape
    s = jax.lax.dot_general(q.astype(_MM_DTYPE), k.astype(_MM_DTYPE),
                            (((1,), (1,)), ((), ())),
                            preferred_element_type=jnp.float32)
    s = s * (1.0 / (float(hd) ** 0.5))
    row = jax.lax.broadcasted_iota(jnp.int32, (S, S), 0)
    col = jax.lax.broadcasted_iota(jnp.int32, (S, S), 1)
    s = jnp.where(col <= row, s, -1e30)                 # finite mask (NaN-safe)
    p = jnp.exp(s - jnp.max(s, axis=-1, keepdims=True))
    p = p * pl.reciprocal(jnp.sum(p, axis=-1, keepdims=True), approx=True)
    o_ref[...] = jnp.dot(p.astype(_MM_DTYPE), v_ref[...].astype(_MM_DTYPE),
                         preferred_element_type=jnp.float32)


def _linear_res_kernel(x_ref, w_ref, b_ref, r_ref, o_ref):
    # Output projection + residual fused into one lane-dense store.
    o_ref[...] = (jnp.dot(x_ref[...].astype(_MM_DTYPE), w_ref[...].astype(_MM_DTYPE),
                          preferred_element_type=jnp.float32)
                  + b_ref[...] + r_ref[...])


def _router_kernel(x_ref, nw_ref, inv_ref, w_ref, b_ref, o_ref):
    # RMSNorm scale folded into the router projection.
    xs = x_ref[...] * (nw_ref[...] * inv_ref[0, 0])
    o_ref[...] = (jnp.dot(xs.astype(_MM_DTYPE), w_ref[...].astype(_MM_DTYPE),
                          preferred_element_type=jnp.float32) + b_ref[...])


def _moe_kernel(hit_ref, remap_ref, h_ref, nw_ref, inv_ref, w01_ref, b01_ref,
                w2_ref, b2_ref, comb_ref, o_ref, xn_ref, acc_ref):
    t = pl.program_id(0)              # token-tile axis ("parallel")
    e = pl.program_id(1)              # expert axis ("arbitrary", accumulated)
    n_e = pl.num_programs(1)

    @pl.when(e == 0)
    def _():
        # Normed activations computed once per tile (RMSNorm scale folded in).
        xn_ref[...] = h_ref[...] * (nw_ref[...] * inv_ref[0, 0])
        acc_ref[...] = jnp.zeros_like(acc_ref)

    # Skip compute for experts no token in this tile routed to.  The weight
    # BlockSpecs use the prefetched remap table so the DMA is skipped as well.
    @pl.when(hit_ref[t * n_e + e] > 0)
    def _():
        x = xn_ref[...].astype(_MM_DTYPE)
        h01 = (jnp.dot(x, w01_ref[...].astype(_MM_DTYPE),
                       preferred_element_type=jnp.float32) + b01_ref[...])
        hh = h01.shape[-1] // 2
        h0 = h01[:, :hh]
        h1 = h01[:, hh:]
        g = h0 * (h1 * jax.nn.sigmoid(h1))              # w0(x) * SiLU(w1(x))
        w_e = comb_ref[...]                             # (tm, 1) combine weight
        # Fold the combine scale in BEFORE W2 (scales the (tm, H) tile in vregs).
        acc_ref[...] += (jnp.dot((w_e * g).astype(_MM_DTYPE),
                                 w2_ref[...].astype(_MM_DTYPE),
                                 preferred_element_type=jnp.float32)
                         + w_e * b2_ref[...])

    @pl.when(e == n_e - 1)
    def _():
        # Single lane-dense write: MoE output + FFN residual.
        o_ref[...] = acc_ref[...] + h_ref[...]


# ------------------------------ pallas_call wrappers ------------------------ #

def _pick_tile(seq_len):
    for cand in (_TOKEN_TILE, 128, 64, 32, 16, 8):
        if cand <= seq_len and seq_len % cand == 0:
            return cand
    return seq_len


def sumsq_inv(x2d, tm):
    T, D = x2d.shape
    return pl.pallas_call(
        _sumsq_inv_kernel,
        out_shape=jax.ShapeDtypeStruct((1, 1), jnp.float32),
        grid=(T // tm,),
        in_specs=[pl.BlockSpec((tm, D), lambda t: (t, 0))],
        out_specs=pl.BlockSpec((1, 1), lambda t: (0, 0)),
        compiler_params=pltpu.CompilerParams(
            dimension_semantics=("arbitrary",),
            vmem_limit_bytes=_VMEM_LIMIT),
    )(x2d)


def qkv_project(x2d, norm_w, inv, w_t, b, cos, sin, *, dq, dk, seq_len, tm):
    T, D = x2d.shape
    dtot = w_t.shape[1]
    dv = dtot - dq - dk
    half = cos.shape[-1]
    blocks_per_seq = seq_len // tm
    return pl.pallas_call(
        _qkv_rope_kernel,
        out_shape=(jax.ShapeDtypeStruct((T, dq), jnp.float32),
                   jax.ShapeDtypeStruct((T, dk), jnp.float32),
                   jax.ShapeDtypeStruct((T, dv), jnp.float32)),
        grid=(T // tm,),
        in_specs=[
            pl.BlockSpec((tm, D), lambda t: (t, 0)),                 # activations
            pl.BlockSpec((1, D), lambda t: (0, 0)),                  # norm weight
            pl.BlockSpec(memory_space=pltpu.MemorySpace.SMEM),       # inv scalar
            pl.BlockSpec((D, dtot), lambda t: (0, 0)),               # fused QKV W
            pl.BlockSpec((1, dtot), lambda t: (0, 0)),               # fused bias
            pl.BlockSpec((tm, half), lambda t: (t % blocks_per_seq, 0)),  # cos
            pl.BlockSpec((tm, half), lambda t: (t % blocks_per_seq, 0)),  # sin
        ],
        out_specs=(pl.BlockSpec((tm, dq), lambda t: (t, 0)),
                   pl.BlockSpec((tm, dk), lambda t: (t, 0)),
                   pl.BlockSpec((tm, dv), lambda t: (t, 0))),
        compiler_params=pltpu.CompilerParams(
            dimension_semantics=("parallel",),
            vmem_limit_bytes=_VMEM_LIMIT),
    )(x2d, norm_w, inv, w_t, b, cos, sin)


def attention_core(q4, k4, v4, group):
    # q4: (B, Hq, S, hd), k4/v4: (B, Hkv, S, hd).  Grid (B, Hkv, group): K/V
    # index_maps are independent of the innermost group axis -> fetched once per
    # kv head.  q head index = g*Hkv + kv, matching the module's repeat/reshape
    # ordering (q head h uses kv head h % Hkv).
    B, Hq, S, hd = q4.shape
    Hkv = k4.shape[1]
    return pl.pallas_call(
        _attn_kernel,
        out_shape=jax.ShapeDtypeStruct((B, Hq, S, hd), jnp.float32),
        grid=(B, Hkv, group),
        in_specs=[
            pl.BlockSpec((None, None, S, hd), lambda b, kv, g: (b, g * Hkv + kv, 0, 0)),
            pl.BlockSpec((None, None, S, hd), lambda b, kv, g: (b, kv, 0, 0)),
            pl.BlockSpec((None, None, S, hd), lambda b, kv, g: (b, kv, 0, 0)),
        ],
        out_specs=pl.BlockSpec((None, None, S, hd),
                               lambda b, kv, g: (b, g * Hkv + kv, 0, 0)),
        compiler_params=pltpu.CompilerParams(
            dimension_semantics=("parallel", "parallel", "arbitrary"),
            vmem_limit_bytes=_VMEM_LIMIT),
    )(q4, k4, v4)


def linear_residual(x2d, w_t, b, res2d, *, tm):
    T, D = x2d.shape
    dout = w_t.shape[1]
    return pl.pallas_call(
        _linear_res_kernel,
        out_shape=jax.ShapeDtypeStruct((T, dout), jnp.float32),
        grid=(T // tm,),
        in_specs=[
            pl.BlockSpec((tm, D), lambda t: (t, 0)),
            pl.BlockSpec((D, dout), lambda t: (0, 0)),
            pl.BlockSpec((1, dout), lambda t: (0, 0)),
            pl.BlockSpec((tm, dout), lambda t: (t, 0)),
        ],
        out_specs=pl.BlockSpec((tm, dout), lambda t: (t, 0)),
        compiler_params=pltpu.CompilerParams(
            dimension_semantics=("parallel",),
            vmem_limit_bytes=_VMEM_LIMIT),
    )(x2d, w_t, b, res2d)


def router_logits(h2d, norm_w, inv, wg_t, bg, *, tm):
    T, D = h2d.shape
    E = wg_t.shape[1]
    return pl.pallas_call(
        _router_kernel,
        out_shape=jax.ShapeDtypeStruct((T, E), jnp.float32),
        grid=(T // tm,),
        in_specs=[
            pl.BlockSpec((tm, D), lambda t: (t, 0)),
            pl.BlockSpec((1, D), lambda t: (0, 0)),
            pl.BlockSpec(memory_space=pltpu.MemorySpace.SMEM),
            pl.BlockSpec((D, E), lambda t: (0, 0)),
            pl.BlockSpec((1, E), lambda t: (0, 0)),
        ],
        out_specs=pl.BlockSpec((tm, E), lambda t: (t, 0)),
        compiler_params=pltpu.CompilerParams(
            dimension_semantics=("parallel",),
            vmem_limit_bytes=_VMEM_LIMIT),
    )(h2d, norm_w, inv, wg_t, bg)


def moe_ffn(hit, remap, h2d, norm_w, inv, comb_t, lp, *, tm):
    T, D = h2d.shape
    E, _, H2 = lp["w01_t"].shape
    H = lp["w2_t"].shape[1]
    nt = T // tm
    # Weight index_maps use the prefetched remap table: a missed (t, e) repeats
    # the previously fetched expert's block index, so Pallas skips the DMA.
    w_idx = lambda t, e, hit_r, rm_r: (rm_r[t * E + e], 0, 0)
    return pl.pallas_call(
        _moe_kernel,
        out_shape=jax.ShapeDtypeStruct((T, D), jnp.float32),
        grid_spec=pltpu.PrefetchScalarGridSpec(
            num_scalar_prefetch=2,                 # hit flags + remap -> SMEM
            grid=(nt, E),                          # token tiles outer, experts inner
            in_specs=[
                pl.BlockSpec((tm, D), lambda t, e, hit_r, rm_r: (t, 0)),   # h
                pl.BlockSpec((1, D), lambda t, e, hit_r, rm_r: (0, 0)),    # norm w
                pl.BlockSpec(memory_space=pltpu.MemorySpace.SMEM),         # inv
                pl.BlockSpec((None, D, H2), w_idx),                        # [W0|W1]^T
                pl.BlockSpec((None, 1, H2), w_idx),                        # [b0|b1]
                pl.BlockSpec((None, H, D), w_idx),                         # W2^T
                pl.BlockSpec((None, 1, D), w_idx),                         # b2
                pl.BlockSpec((None, tm, 1), lambda t, e, hit_r, rm_r: (e, t, 0)),  # comb
            ],
            out_specs=pl.BlockSpec((tm, D), lambda t, e, hit_r, rm_r: (t, 0)),
            scratch_shapes=[pltpu.VMEM((tm, D), jnp.float32),   # xn (normed tile)
                            pltpu.VMEM((tm, D), jnp.float32)],  # accumulator
        ),
        compiler_params=pltpu.CompilerParams(
            dimension_semantics=("parallel", "arbitrary"),
            vmem_limit_bytes=_VMEM_LIMIT),
    )(hit, remap, h2d, norm_w, inv, lp["w01_t"], lp["b01"], lp["w2_t"], lp["b2"],
      comb_t)


# ------------------------------ decoder forward ----------------------------- #

def transformer_layer(lp, x2d, B, S, cos, sin, cfg, tm):
    D = cfg["input_dim"]
    Hq, Hkv = cfg["n_q_heads"], cfg["n_kv_heads"]
    hd = D // Hq
    group = Hq // Hkv
    T = B * S

    # ---- attention block ----
    inv1 = sumsq_inv(x2d, tm)
    q, k, v = qkv_project(x2d, lp["att_norm_w"], inv1, lp["wqkv_t"], lp["bqkv"],
                          cos, sin, dq=Hq * hd, dk=Hkv * hd, seq_len=S, tm=tm)
    # TODO(synk): at production dims (hd multiple of 128) drop these head-major
    # XLA transposes and read per-head lane slices from the 2-D arrays.
    q4 = q.reshape(B, S, Hq, hd).transpose(0, 2, 1, 3)
    k4 = k.reshape(B, S, Hkv, hd).transpose(0, 2, 1, 3)
    v4 = v.reshape(B, S, Hkv, hd).transpose(0, 2, 1, 3)
    o4 = attention_core(q4, k4, v4, group)
    o2d = o4.transpose(0, 2, 1, 3).reshape(T, D)
    h = linear_residual(o2d, lp["wo_t"], lp["bo"], x2d, tm=tm)

    # ---- MoE FFN block ----
    inv2 = sumsq_inv(h, tm)
    logits = router_logits(h, lp["ffn_norm_w"], inv2, lp["wg_t"], lp["bg"], tm=tm)
    E = logits.shape[-1]
    top_vals, top_idx = jax.lax.top_k(logits, cfg["top_k"])
    wts = jax.nn.softmax(top_vals, axis=-1)
    comb = jnp.sum(
        (top_idx[..., None] == jnp.arange(E)[None, None, :]).astype(jnp.float32)
        * wts[..., None], axis=1)                               # (T, E) dense combine
    nt = T // tm
    hit2 = (comb.reshape(nt, tm, E) > 0).any(axis=1)            # (nt, E)
    hit = hit2.astype(jnp.int32).reshape(-1)                    # flat 1-D (SMEM cheap)
    # remap[t, e] = e for a hit, else the last hit expert <= e (or first hit in
    # the tile) so the weight block index only changes on real fetches.
    marks = jnp.where(hit2, jnp.arange(E, dtype=jnp.int32)[None, :], -1)
    last_hit = jax.lax.cummax(marks, axis=1)
    first_hit = jnp.argmax(hit2, axis=1).astype(jnp.int32)
    remap = jnp.where(last_hit >= 0, last_hit,
                      first_hit[:, None]).astype(jnp.int32).reshape(-1)
    comb_t = jnp.transpose(comb)[:, :, None]                    # (E, T, 1)

    return moe_ffn(hit, remap, h, lp["ffn_norm_w"], inv2, comb_t, lp, tm=tm)


def decoder_forward(params, x, cfg):
    B, S, D = x.shape
    T = B * S
    tm = _pick_tile(S)
    cos = params["cos"][:S]
    sin = params["sin"][:S]
    h = x.reshape(T, D).astype(jnp.float32)
    for lp in params["layers"]:
        h = transformer_layer(lp, h, B, S, cos, sin, cfg, tm)
    return h.reshape(B, S, D)


# --------------------------- deterministic params --------------------------- #

def _init_linear(key, fan_in, fan_out):
    bound = 1.0 / (fan_in ** 0.5)
    kw, kb = jax.random.split(key)
    w = jax.random.uniform(kw, (fan_out, fan_in), jnp.float32, -bound, bound)
    b = jax.random.uniform(kb, (fan_out,), jnp.float32, -bound, bound)
    return w.T, b[None, :]          # pre-transposed: (fan_in, fan_out), (1, fan_out)


def _deinterleave_cols(w_t, b, n_heads, hd):
    # Reorder output columns so each head is [even-half | odd-half]: RoPE becomes
    # two contiguous-half multiplies inside the projection kernel, zero runtime cost.
    cols = jnp.arange(n_heads * hd).reshape(n_heads, hd)
    perm = jnp.concatenate([cols[:, 0::2], cols[:, 1::2]], axis=1).reshape(-1)
    return w_t[:, perm], b[:, perm]


def init_params(key, cfg):
    D, H = cfg["input_dim"], cfg["hide_dim"]
    Hq, Hkv, E = cfg["n_q_heads"], cfg["n_kv_heads"], cfg["num_experts"]
    hd = D // Hq

    layers = []
    for lk in jax.random.split(key, cfg["num_layers"]):
        ks = jax.random.split(lk, 8)
        wq_t, bq = _init_linear(ks[0], D, Hq * hd)
        wk_t, bk = _init_linear(ks[1], D, Hkv * hd)
        wv_t, bv = _init_linear(ks[2], D, Hkv * hd)
        wo_t, bo = _init_linear(ks[3], D, D)
        wg_t, bg = _init_linear(ks[4], D, E)

        wq_p, bq_p = _deinterleave_cols(wq_t, bq, Hq, hd)
        wk_p, bk_p = _deinterleave_cols(wk_t, bk, Hkv, hd)
        wqkv_t = jnp.concatenate([wq_p, wk_p, wv_t], axis=1)
        bqkv = jnp.concatenate([bq_p, bk_p, bv], axis=1)

        w0s, b0s, w1s, b1s, w2s, b2s = [], [], [], [], [], []
        for ek in jax.random.split(ks[5], E):
            k0, k1, k2 = jax.random.split(ek, 3)
            w0, b0 = _init_linear(k0, D, H)
            w1, b1 = _init_linear(k1, D, H)
            w2, b2 = _init_linear(k2, H, D)
            w0s.append(w0); b0s.append(b0)
            w1s.append(w1); b1s.append(b1)
            w2s.append(w2); b2s.append(b2)
        w0_t = jnp.stack(w0s); b0 = jnp.stack(b0s)     # (E, D, H), (E, 1, H)
        w1_t = jnp.stack(w1s); b1 = jnp.stack(b1s)
        w2_t = jnp.stack(w2s); b2 = jnp.stack(b2s)     # (E, H, D), (E, 1, D)

        layers.append({
            "att_norm_w": jax.random.normal(ks[6], (1, D), jnp.float32),
            "ffn_norm_w": jax.random.normal(ks[7], (1, D), jnp.float32),
            # reference (unfused) weights
            "wq_t": wq_t, "bq": bq, "wk_t": wk_t, "bk": bk, "wv_t": wv_t, "bv": bv,
            "wo_t": wo_t, "bo": bo, "wg_t": wg_t, "bg": bg,
            "w0_t": w0_t, "b0": b0, "w1_t": w1_t, "b1": b1, "w2_t": w2_t, "b2": b2,
            # kernel-side fused / pre-permuted weights
            "wqkv_t": wqkv_t, "bqkv": bqkv,
            "w01_t": jnp.concatenate([w0_t, w1_t], axis=2),   # (E, D, 2H)
            "b01": jnp.concatenate([b0, b1], axis=2),         # (E, 1, 2H)
        })

    # RoPE tables: precompute_freqs_cis(head_dim, 4096*2, theta=50000) as cos/sin.
    end = 4096 * 2
    freqs = 1.0 / (50000.0 ** (jnp.arange(0, hd, 2)[: hd // 2].astype(jnp.float32) / hd))
    t = jnp.arange(end, dtype=jnp.float32)
    ang = jnp.outer(t, freqs)
    return {"layers": layers, "cos": jnp.cos(ang), "sin": jnp.sin(ang)}


# ----------------------------- pure-JAX reference --------------------------- #

def _ref_rmsnorm(x, w_row):
    return w_row.reshape(-1) * x / (jnp.sqrt(jnp.sum(x ** 2)) + 1e-6)


def _ref_rope(x, cos, sin):
    x0 = x[..., 0::2]
    x1 = x[..., 1::2]
    c = cos[None, :, None, :]
    s = sin[None, :, None, :]
    return jnp.stack([x0 * c - x1 * s, x0 * s + x1 * c], axis=-1).reshape(x.shape)


def _ref_attention(x, lp, cos, sin, cfg):
    B, S, D = x.shape
    Hq, Hkv = cfg["n_q_heads"], cfg["n_kv_heads"]
    hd = D // Hq
    group = Hq // Hkv
    q = (x @ lp["wq_t"] + lp["bq"]).reshape(B, S, Hq, hd)
    k = (x @ lp["wk_t"] + lp["bk"]).reshape(B, S, Hkv, hd)
    v = (x @ lp["wv_t"] + lp["bv"]).reshape(B, S, Hkv, hd)
    q = _ref_rope(q, cos, sin).transpose(0, 2, 1, 3)
    k = _ref_rope(k, cos, sin).transpose(0, 2, 1, 3)
    v = v.transpose(0, 2, 1, 3)
    k = jnp.tile(k[:, None], (1, group, 1, 1, 1)).reshape(B, Hq, S, hd)
    v = jnp.tile(v[:, None], (1, group, 1, 1, 1)).reshape(B, Hq, S, hd)
    s = jnp.einsum("bhqd,bhkd->bhqk", q, k) / (hd ** 0.5)
    causal = jnp.where(jnp.triu(jnp.ones((S, S)), k=1) == 1, -jnp.inf, 0.0)
    p = jax.nn.softmax(s + causal, axis=-1)
    o = jnp.einsum("bhqk,bhkd->bhqd", p, v)
    o = o.transpose(0, 2, 1, 3).reshape(B, S, D)
    return o @ lp["wo_t"] + lp["bo"]


def _ref_moe(x, lp, cfg):
    B, S, D = x.shape
    x2 = x.reshape(B * S, D)
    E = cfg["num_experts"]
    logits = x2 @ lp["wg_t"] + lp["bg"]
    tv, ti = jax.lax.top_k(logits, cfg["top_k"])
    wts = jax.nn.softmax(tv, axis=-1)
    comb = jnp.sum((ti[..., None] == jnp.arange(E)).astype(jnp.float32)
                   * wts[..., None], axis=1)

    def ffn(e):
        h0 = x2 @ lp["w0_t"][e] + lp["b0"][e]
        h1 = x2 @ lp["w1_t"][e] + lp["b1"][e]
        return (h0 * (h1 * jax.nn.sigmoid(h1))) @ lp["w2_t"][e] + lp["b2"][e]

    ys = jnp.stack([ffn(e) for e in range(E)], axis=0)     # (E, T, D)
    return jnp.sum(comb.T[:, :, None] * ys, axis=0).reshape(B, S, D)


def reference_forward(params, x, cfg):
    B, S, _ = x.shape
    cos = params["cos"][:S]
    sin = params["sin"][:S]
    h = x
    for lp in params["layers"]:
        a = _ref_rmsnorm(h, lp["att_norm_w"])
        a = _ref_attention(a, lp, cos, sin, cfg)
        h = h + a
        y = _ref_rmsnorm(h, lp["ffn_norm_w"])
        y = _ref_moe(y, lp, cfg)
        h = h + y
    return h


# ----------------------------------- main ----------------------------------- #

if __name__ == "__main__":
    cfg = dict(num_layers=2, input_dim=32, hide_dim=64,
               n_q_heads=4, n_kv_heads=2, num_experts=4, top_k=2)
    B, S = 2, 8

    key = jax.random.PRNGKey(0)
    kp, kx = jax.random.split(key)
    params = init_params(kp, cfg)
    x = jax.random.normal(kx, (B, S, cfg["input_dim"]), jnp.float32)

    out = decoder_forward(params, x, cfg)
    out = jax.block_until_ready(out)

    ref = reference_forward(params, x, cfg)
    assert out.shape == (B, S, cfg["input_dim"])
    assert jnp.allclose(out, ref, rtol=1e-2, atol=1e-2), "mismatch vs pure-JAX reference"

    print("KERNEL_OK")
</pallas_src>

<mosaic_0001>
module attributes {stable_mosaic.version = 11 : i64} {
  func.func @_sumsq_inv_kernel(%arg0: i32, %arg1: memref<8x32xf32, #tpu.memory_space<vmem>>, %arg2: memref<1x1xf32, #tpu.memory_space<vmem>>) attributes {dimension_semantics = [#tpu.dimension_semantics<arbitrary>], iteration_bounds = array<i64: 2>, scalar_prefetch = 0 : i64, scratch_operands = 0 : i64, tpu.core_type = #tpu.core_type<tc>, window_params = [{transform_indices = @transform_0, window_bounds = array<i64: 8, 32>}, {pipeline_mode = #tpu.pipeline_mode<synchronous>, transform_indices = @transform_1, window_bounds = array<i64: 1, 1>}]} {
    %c0_i32 = arith.constant 0 : i32
    %0 = arith.cmpi eq, %arg0, %c0_i32 : i32
    %1 = arith.extui %0 : i1 to i32
    %c0_i32_0 = arith.constant 0 : i32
    %2 = arith.cmpi ne, %1, %c0_i32_0 : i32
    scf.if %2 {
      %cst_7 = arith.constant 0.000000e+00 : f32
      %16 = vector.broadcast %cst_7 : f32 to vector<1x1xf32>
      %c0_8 = arith.constant 0 : index
      %c0_9 = arith.constant 0 : index
      %17 = vector.load %arg2[%c0_8, %c0_9] : memref<1x1xf32, #tpu.memory_space<vmem>>, vector<1x1xf32>
      tpu.vector_store %arg2[%c0_8, %c0_9], %16 {strides = array<i32>} : memref<1x1xf32, #tpu.memory_space<vmem>>, vector<1x1xf32>,
    } else {
    }
    %c0 = arith.constant 0 : index
    %c0_1 = arith.constant 0 : index
    %3 = vector.load %arg1[%c0, %c0_1] : memref<8x32xf32, #tpu.memory_space<vmem>>, vector<8x32xf32>
    %c0_2 = arith.constant 0 : index
    %c0_3 = arith.constant 0 : index
    %4 = vector.load %arg2[%c0_2, %c0_3] : memref<1x1xf32, #tpu.memory_space<vmem>>, vector<1x1xf32>
    %5 = arith.mulf %3, %3 : vector<8x32xf32>
    %6 = vector.shape_cast %5 : vector<8x32xf32> to vector<1x8x32xf32>
    %cst = arith.constant dense<0.000000e+00> : vector<1xf32>
    %7 = vector.multi_reduction <add>, %6, %cst [1, 2] : vector<1x8x32xf32> to vector<1xf32>
    %8 = vector.shape_cast %7 : vector<1xf32> to vector<1x1x1xf32>
    %9 = vector.extract %8[0, 0, 0] : f32 from vector<1x1x1xf32>
    %10 = vector.broadcast %9 : f32 to vector<1x1xf32>
    %11 = arith.addf %4, %10 : vector<1x1xf32>
    %c0_4 = arith.constant 0 : index
    %c0_5 = arith.constant 0 : index
    %12 = vector.load %arg2[%c0_4, %c0_5] : memref<1x1xf32, #tpu.memory_space<vmem>>, vector<1x1xf32>
    tpu.vector_store %arg2[%c0_4, %c0_5], %11 {strides = array<i32>} : memref<1x1xf32, #tpu.memory_space<vmem>>, vector<1x1xf32>,
    %c1_i32 = arith.constant 1 : i32
    %13 = arith.cmpi eq, %arg0, %c1_i32 : i32
    %14 = arith.extui %13 : i1 to i32
    %c0_i32_6 = arith.constant 0 : i32
    %15 = arith.cmpi ne, %14, %c0_i32_6 : i32
    scf.if %15 {
      %c0_7 = arith.constant 0 : index
      %c0_8 = arith.constant 0 : index
      %16 = vector.load %arg2[%c0_7, %c0_8] : memref<1x1xf32, #tpu.memory_space<vmem>>, vector<1x1xf32>
      %17 = math.sqrt %16 : vector<1x1xf32>
      %cst_9 = arith.constant 9.99999997E-7 : f32
      %18 = vector.broadcast %cst_9 : f32 to vector<1x1xf32>
      %19 = arith.addf %17, %18 : vector<1x1xf32>
      %cst_10 = arith.constant 1.000000e+00 : f32
      %20 = vector.broadcast %cst_10 : f32 to vector<1x1xf32>
      %21 = arith.divf %20, %19 : vector<1x1xf32>
      %c0_11 = arith.constant 0 : index
      %c0_12 = arith.constant 0 : index
      %22 = vector.load %arg2[%c0_11, %c0_12] : memref<1x1xf32, #tpu.memory_space<vmem>>, vector<1x1xf32>
      tpu.vector_store %arg2[%c0_11, %c0_12], %21 {strides = array<i32>} : memref<1x1xf32, #tpu.memory_space<vmem>>, vector<1x1xf32>,
    } else {
    }
    return
  }
  func.func @transform_0(%arg0: i32) -> (i32, i32) {
    %c0_i32 = arith.constant 0 : i32
    %c0_i32_0 = arith.constant 0 : i32
    return %arg0, %c0_i32 : i32, i32
  }
  func.func @transform_1(%arg0: i32) -> (i32, i32) {
    %c0_i32 = arith.constant 0 : i32
    %c0_i32_0 = arith.constant 0 : i32
    %c0_i32_1 = arith.constant 0 : i32
    return %c0_i32, %c0_i32_0 : i32, i32
  }
}

</mosaic_0001>

<bundles_post_ra>
// kernel: tpu_custom_call.1
= control target key start
LH: loop header
LB: loop body
LE: loop exit
PB: predicated region body
PF: predicated region fallthrough
CT: control target
= control target key end

     0   :  { %6 = vsyncpa [#allocation3], 0  ;;  %s512_s0 = inlined_call_operand.hbm [shape: f32[16,32], index: 0, kind: input, shape index: {}]   ;;  %s513_s1 = inlined_call_operand.hbm [shape: f32[1,1], index: 1, kind: output, shape index: {}]  }
   0x1   :  { %8 = vsyncpa [#allocation3 + $0x1], 0 }
   0x2   :  { %9 = vsyncpa [#allocation4], 0  ;;  %s415_s6 = smov 0   ;;  %s417_s7 = smov 0  }
   0x3   :  { %s419_s8 = smov 0   ;;  %s421_s9 = smov 0  }
   0x4 LB: > { %s434_s10 = sadd.s32 4294967295, %s401_s9   ;;  %s437_s11 = sadd.s32 1, %s401_s9   ;;  %s401_s9 = sphi %s421_s9, %s520_s9   ;;  %s397_s8 = sphi %s419_s8, %s519_s8   ;;  %s393_s7 = sphi %s417_s7, %s518_s7   ;;  %s389_s6 = sphi %s415_s6, %s517_s6  }
   0x5   : > { %s19_s12 = ssub.s32 %s401_s9, %s437_s11  ;;  %s22_s13 = sadd.s32 1, %s397_s8 }
   0x6   : > { %p20_p0 = scmp.eq.s32.totalorder %s19_s12, 0  ;;  %p29_p1 = scmp.ne.s32.totalorder %s397_s8, %s393_s7 }
   0x7   : > { %p30_p2 = scmp.eq.s32.totalorder %s401_s9, 0  ;;  %p35_p3 = scmp.ne.s32.totalorder %s393_s7, %s389_s6 }
   0x8   : > { %s447_s14 = scalar_select %p20_p0, %s397_s8, %s22_s13  }
   0x9   : > { %p449_p4 = por %p30_p2, %p29_p1  ;;  %p36_p5 = scmp.eq.s32.totalorder %s434_s10, 0 }
   0xa   : > { %p264_p6 = scmp.lt.s32.totalorder %s401_s9, 2  ;;  %s80_s17 = sand.u32 1, %s397_s8  }
   0xb   : > { %p455_p7 = por %p36_p5, %p35_p3  ;;  %s242_s18 = sshll.u32 %s80_s17, 3 }
   0xc   : > { %s243_s19 = sshll.u32 %s401_s9, 3  ;;  %s84_s23 = scalar_lea.vmem [#allocation2], %s242_s18 }
   0xd   : > { %s88_s22 = scalar_lea.hbm %s512_s0, %s243_s19  ;;  %s92_s24 = sshll.u32 %s84_s23, 4  ;;  %s93_s24 = int_to_ptr.vmem [resolvable:$true] %s92_s24 }
   0xe   : > { %s90_s25 = sshll.u32 %s88_s22, 4  ;;  %p466_p8 = pnand %p264_p6, %p449_p4  ;;  %s91_s25 = int_to_ptr.hbm [resolvable:$true] %s90_s25 }
   0xf   : > { %p244_p9 = scmp.ge.s32.totalorder %s401_s9, 1  ;;  %p97_p10 = scmp.lt.s32.totalorder %s401_s9, 3 }
  0x10   : > { %s81_s27 = scalar_lea.sflag [#allocation3], %s80_s17  ;;  %s305_s28 = sshra.s32 %s91_s25, 4  ;;  %s306_s28 = int_to_ptr.hbm [resolvable:$true] %s305_s28 }
  0x11   : > { %s307_s29 = scalar_lea.hbm %s306_s28, 8  ;;  %p309_p12 = pneg %p466_p8 }
  0x12   : > { %p308_p11 = scmp.ne.s32.totalorder %s306_s28, %s307_s29  ;;  %s312_s3 = scalar_lea.hbm %s512_s0, 16 }
  0x13   : > { %p313_p1 = scmp.lt.s32.totalorder %s306_s28, %s512_s0  ;;  %p314_p2 = scmp.lt.s32.totalorder %s312_s3, %s307_s29 }
  0x14   : > { %p310_p13 = pnand %p309_p12, %p308_p11 }
  0x15   : > { %p315_p3 = por %p314_p2, %p313_p1 }
  0x16   : > { %p311_p0 = pneg %p310_p13 }
  0x18   : > { %p316_p4 = pnand %p315_p3, %p311_p0 }
  0x1a   : > { %319 = shalt.err (!%p316_p4)
}
  0x1b   : > { %263 = dma.hbm_to_vmem [thread:$0]  (!%p466_p8), %s91_s25, 128, %s93_s24, %s81_s27  }
  0x1c   : > { %p98_p5 = pnand %p244_p9, %p97_p10 }
  0x1d   : > { %s103_s6 = sand.u32 (!%p98_p5), 1, %s393_s7  }
  0x1e   : > { %101 = sbr.rel (%p98_p5) target bundleno = 284 (0x11c), region = 24  ;;  %s245_s12 = sshll.u32 (!%p98_p5), %s103_s6, 3 }
  0x1f   : > { %s104_s13 = scalar_lea.sflag (!%p98_p5), [#allocation3], %s103_s6  ;;  %s107_s15 = scalar_lea.vmem (!%p98_p5), [#allocation2], %s245_s12 }
  0x23   : > { %380 = dma.done.wait (%p455_p7), %s104_s13, 128  }
  0x24   : > { %382 = vsyncadd (%p455_p7), %s104_s13, 4294967168  ;;  %p246_p6 = scmp.ne.s32.totalorder %s434_s10, 0 }
  0x26   : > { %125 = sbr.rel (%p246_p6) target bundleno = 45 (0x2d), region = 32 }
  0x2b   : > { %vm126_vm0 = vcmask 0   ;;  %v403_v0 = vmov 0.0  }
  0x2c   : > { %127 = vst.msk [vmem:[#allocation5] sm:$0x1] %vm126_vm0, %v403_v0 }
  0x2d PF: > { %v128_v1 = vld [vmem:[%s107_s15] sm:$0xff]  ;;  %vm131_vm1 = vcmask 261120   ;;  %vm144_vm2 = vcmask 0   ;;  %p247_p7 = scmp.ne.s32.totalorder %s434_s10, 1 }
  0x2e   : > { %v130_v2 = vmul.f32 %v128_v1, %v128_v1 }
  0x30   : > { %v132_v3 = vsel %vm131_vm1, %v130_v2, 0.0 }
  0x31   : > { %133 = vadd.xlane.f32.xlu0 %v132_v3 }
  0x33   : > { %v129_v11 = vld [vmem:[#allocation5] sm:$0x1] }
  0xa4   : > { %v134_v4 = vpop.xlane.xlu0 %133 }
  0xa5   : > { %v135_v5 = vrot.slane %v134_v4, 4 }
  0xa7   : > { %v136_v6 = vadd.f32 %v135_v5, %v134_v4 }
  0xa9   : > { %v137_v7 = vrot.slane %v136_v6, 2 }
  0xab   : > { %v138_v8 = vadd.f32 %v137_v7, %v136_v6 }
  0xad   : > { %v139_v9 = vrot.slane %v138_v8, 1 }
  0xaf   : > { %v140_v10 = vadd.f32 %v139_v9, %v138_v8 }
  0xb1   : > { %252 = vpush %v140_v10 }
  0xe2   : > { %s253_s9 = spop %252  ;;  %149 = sbr.rel (%p247_p7) target bundleno = 279 (0x117), region = 36 }
  0xe3   : > { %v142_v12 = vstv %s253_s9 }
  0xe4   : > { %v143_v13 = vadd.f32 %v142_v12, %v129_v11 }
  0xe6   : > { %145 = vst.msk [vmem:[#allocation5] sm:$0x1] %vm144_vm2, %v143_v13 }
  0xed   : > { %v150_v14 = vld [vmem:[#allocation5] sm:$0x1] }
  0xee   : > { %301 = vrsqrt.f32 %v150_v14  ;;  %vm158_vm3 = vcmp.eq.f32.partialorder %v150_v14, inf  ;;  %v161_v21 = vand.u32 2147483648, %v150_v14  ;;  %vm160_vm4 = vcmp.eq.f32.partialorder %v150_v14, 0.0 }
  0xf4   : > { %v302_v15 = vpop.eup %301 }
  0xf5   : > { %v152_v16 = vmul.f32 %v302_v15, %v150_v14 }
  0xf7   : > { %v153_v17 = vmul.f32 %v302_v15, %v152_v16 }
  0xf9   : > { %v154_v18 = vmul.f32 0.5, %v153_v17 }
  0xfb   : > { %v155_v19 = vsub.f32 1.5, %v154_v18 }
  0xfd   : > { %v156_v20 = vmul.f32 %v302_v15, %v155_v19 }
  0xff   : > { %v157_v22 = vmul.f32 %v156_v20, %v150_v14 }
 0x101   : > { %v159_v23 = vsel %vm158_vm3, %v150_v14, %v157_v22 }
 0x102   : > { %v162_v24 = vsel %vm160_vm4, %v161_v21, %v159_v23 }
 0x103   : > { %v163_v25 = vadd.f32 1e-06, %v162_v24 }
 0x105   : > { %303 = vrcp.f32 %v163_v25  ;;  %v175_v28 = vand.u32 2147483648, %v163_v25  ;;  %vm169_vm5 = vweird.f32 %v163_v25  ;;  %v173_v30 = vand.u32 2147483647, %v163_v25 }
 0x107   : > { %v176_v32 = vor.u32 1.1754944e-38, %v175_v28  ;;  %vm174_vm8 = vcmp.eq.f32.partialorder %v173_v30, 8.507059e+37 }
 0x10b   : > { %v304_v26 = vpop.eup %303 }
 0x10c   : > { %v165_v27 = vmul.f32 %v304_v26, %v163_v25  ;;  %vm170_vm6 = vweird.f32 %v304_v26 }
 0x10d   : > { %vm171_vm7 = vmor %vm169_vm5, %vm170_vm6 }
 0x10e   : > { %v166_v29 = vsub.f32 1.0, %v165_v27 }
 0x110   : > { %v167_v31 = vmul.f32 %v304_v26, %v166_v29 }
 0x112   : > { %v168_v33 = vadd.f32 %v304_v26, %v167_v31 }
 0x114   : > { %v172_v34 = vsel %vm171_vm7, %v304_v26, %v168_v33 }
 0x115   : > { %v177_v35 = vsel %vm174_vm8, %v176_v32, %v172_v34 }
 0x116   : > { %179 = vst.msk [vmem:[#allocation5] sm:$0x1] %vm144_vm2, %v177_v35 }
 0x117 PF: > { %p265_p8 = scmp.eq.s32.totalorder %s434_s10, 1  ;;  %s404_s16 = smov [#allocation5]  }
 0x118   : > { %s186_s17 = sshll.u32 %s404_s16, 4  ;;  %s188_s20 = sshll.u32 %s513_s1, 4  ;;  %s187_s17 = int_to_ptr.vmem [resolvable:$true] %s186_s17  ;;  %s189_s20 = int_to_ptr.hbm [resolvable:$true] %s188_s20 }
 0x119   : > { %257 = dma.vmem_to_hbm [thread:$0]  (%p265_p8), %s187_s17, 16, %s189_s20, [#allocation4]  }
 0x11a   : > { %384 = dma.done.wait (%p265_p8), [#allocation4], 16  }
 0x11b   : > { %386 = vsyncadd (%p265_p8), [#allocation4], 4294967280 }
 0x11c PF: > { %p12_p9 = scmp.ge.s32.totalorder %s437_s11, 4   ;;  %s517_s6 = smov %s393_s7 }
 0x11d   : > { %s518_s7 = smov %s397_s8  ;;  %s519_s8 = smov %s447_s14 }
 0x11e   : > { %s520_s9 = smov %s437_s11  ;;  %14 = sbr.rel (!%p12_p9) target bundleno = 4 (0x4), region = 69 }
 0x123   :  { %202 = vsyncpa [#allocation3], 1 }
 0x124   :  { %204 = vsyncpa [#allocation3 + $0x1], 1 }
 0x125   :  { %205 = vsyncpa [#allocation4], 1 }
 0x126   :  { %207 = vsyncpa [#allocation4 + $0x1], 1 }

</bundles_post_ra>
